<compile_context>
chip_gen: v6e
topology: v6e:2x2x1
jax: 0.10.0
libtpu: 0.0.40
codegen_flags: <defaults>
</compile_context>

<pallas_src>
import jax
import jax.numpy as jnp
from jax.experimental import pallas as pl
from jax.experimental.pallas import tpu as pltpu


def _round_up(x, m):
    return ((x + m - 1) // m) * m


def residual_block_kernel(x_ref, w1_ref, b1_ref, w2_ref, b2_ref, o_ref):
    x = x_ref[...]  # f32 (tile_b, D)

    # fc1 on the MXU in the weights' dtype (bf16 on the fast path), f32 acc.
    h = jnp.dot(x.astype(w1_ref.dtype), w1_ref[...],
                preferred_element_type=jnp.float32)
    h = jnp.maximum(h + b1_ref[...], 0.0)          # bias + ReLU in f32 (VPU)

    # fc2 + bias + residual add, all accumulation / elementwise in f32.
    y = jnp.dot(h.astype(w2_ref.dtype), w2_ref[...],
                preferred_element_type=jnp.float32)
    o_ref[...] = (x + y + b2_ref[...]).astype(o_ref.dtype)


def residual_block(x, w1, b1, w2, b2, *, tile_b=None,
                   matmul_dtype=jnp.bfloat16):
    """x: (B, D) f32. w1, w2: (D, D) pre-transposed Linear weights (in, out).
    b1, b2: (D,) or (1, D). matmul_dtype controls MXU operand dtype only;
    accumulation, biases and the residual add are always f32."""
    B, D = x.shape

    # MXU operand dtype (bf16 => ~2-4x MXU rate on v6e/v7x, halved weight DMA).
    w1m = w1.astype(matmul_dtype)
    w2m = w2.astype(matmul_dtype)
    b1 = jnp.asarray(b1, jnp.float32).reshape(1, D)
    b2 = jnp.asarray(b2, jnp.float32).reshape(1, D)

    # Large M tile for the MXU; multiple of 8 (f32 sublane). Capped at 256 so
    # big batches produce >=2 grid steps (lets v7x shard the parallel axis
    # across its 2 TensorCores; harmless on single-TC v5e/v6e).
    if tile_b is None:
        tile_b = min(256, _round_up(B, 8))
    tile_b = max(8, (tile_b // 8) * 8)

    # Pad batch so the grid covers every row exactly (no silent truncation).
    Bp = _round_up(B, tile_b)
    xp = x if Bp == B else jnp.pad(x, ((0, Bp - B), (0, 0)))
    grid = (Bp // tile_b,)

    flops = 4 * Bp * D * D + 4 * Bp * D  # two (Bp,D)x(D,D) matmuls + adds
    bytes_accessed = (2 * xp.size * xp.dtype.itemsize
                      + w1m.size * w1m.dtype.itemsize
                      + w2m.size * w2m.dtype.itemsize
                      + 4 * (b1.size + b2.size))

    # TODO(synk): if D ever grows past ~2-4k, tile the weights over N/K with an
    # f32 accumulator instead of keeping whole DxD weights resident; trivial at
    # D=128 so omitted here.
    out = pl.pallas_call(
        residual_block_kernel,
        out_shape=jax.ShapeDtypeStruct((Bp, D), x.dtype),
        grid_spec=pltpu.PrefetchScalarGridSpec(
            num_scalar_prefetch=0,
            grid=grid,
            in_specs=[
                pl.BlockSpec((tile_b, D), lambda i: (i, 0)),   # x tile
                pl.BlockSpec((D, D), lambda i: (0, 0)),        # w1 (resident)
                pl.BlockSpec((1, D), lambda i: (0, 0)),        # b1
                pl.BlockSpec((D, D), lambda i: (0, 0)),        # w2 (resident)
                pl.BlockSpec((1, D), lambda i: (0, 0)),        # b2
            ],
            out_specs=pl.BlockSpec((tile_b, D), lambda i: (i, 0)),
        ),
        compiler_params=pltpu.CompilerParams(
            dimension_semantics=("parallel",)),
        cost_estimate=pl.CostEstimate(flops=flops, transcendentals=0,
                                      bytes_accessed=bytes_accessed),
    )(xp, w1m, b1, w2m, b2)

    return out[:B] if Bp != B else out


def reference(x, w1, b1, w2, b2):
    h = jnp.maximum(x @ w1 + b1.reshape(1, -1), 0.0)
    return x + (h @ w2 + b2.reshape(1, -1))


if __name__ == "__main__":
    D = 128  # feature dim of the ResidualBlock (lane-aligned)
    key = jax.random.PRNGKey(0)
    kx, k1, kb1, k2, kb2, kx2 = jax.random.split(key, 6)

    # Deterministic parameter init (shapes mirror nn.Linear(dim, dim)).
    # PyTorch Linear weight is (out, in); we store the transpose (in, out).
    bound = 1.0 / jnp.sqrt(D)
    w1 = jax.random.uniform(k1, (D, D), minval=-bound, maxval=bound,
                            dtype=jnp.float32)
    b1 = jax.random.uniform(kb1, (D,), minval=-bound, maxval=bound,
                            dtype=jnp.float32)
    w2 = jax.random.uniform(k2, (D, D), minval=-bound, maxval=bound,
                            dtype=jnp.float32)
    b2 = jax.random.uniform(kb2, (D,), minval=-bound, maxval=bound,
                            dtype=jnp.float32)

    # --- Case 1: small, non-multiple-of-8 batch, bf16 MXU operands ----------
    B1 = 12
    x1 = jax.random.normal(kx, (B1, D), dtype=jnp.float32)
    out1 = jax.block_until_ready(residual_block(x1, w1, b1, w2, b2))
    ref1 = reference(x1, w1, b1, w2, b2)
    assert out1.shape == (B1, D)
    assert jnp.allclose(out1, ref1, atol=5e-2, rtol=5e-2), "bf16-path mismatch"

    # --- Case 2: multi-step grid, pure f32 path (tight tolerance) -----------
    B2 = 64
    x2 = jax.random.normal(kx2, (B2, D), dtype=jnp.float32)
    out2 = jax.block_until_ready(
        residual_block(x2, w1, b1, w2, b2, tile_b=16,
                       matmul_dtype=jnp.float32))
    ref2 = reference(x2, w1, b1, w2, b2)
    assert out2.shape == (B2, D)
    assert jnp.allclose(out2, ref2, atol=1e-4, rtol=1e-4), "f32-path mismatch"

    print("KERNEL_OK")
</pallas_src>

<mosaic_0001>
module attributes {stable_mosaic.version = 11 : i64} {
  func.func @residual_block_kernel(%arg0: i32, %arg1: memref<16x128xf32, #tpu.memory_space<vmem>>, %arg2: memref<128x128xbf16, #tpu.memory_space<vmem>>, %arg3: memref<1x128xf32, #tpu.memory_space<vmem>>, %arg4: memref<128x128xbf16, #tpu.memory_space<vmem>>, %arg5: memref<1x128xf32, #tpu.memory_space<vmem>>, %arg6: memref<16x128xf32, #tpu.memory_space<vmem>>) attributes {dimension_semantics = [#tpu.dimension_semantics<parallel>], iteration_bounds = array<i64: 1>, scalar_prefetch = 0 : i64, scratch_operands = 0 : i64, tpu.core_type = #tpu.core_type<tc>, window_params = [{transform_indices = @transform_0, window_bounds = array<i64: 16, 128>}, {pipeline_mode = #tpu.pipeline_mode<synchronous>, transform_indices = @transform_1, window_bounds = array<i64: 128, 128>}, {pipeline_mode = #tpu.pipeline_mode<synchronous>, transform_indices = @transform_2, window_bounds = array<i64: 1, 128>}, {pipeline_mode = #tpu.pipeline_mode<synchronous>, transform_indices = @transform_3, window_bounds = array<i64: 128, 128>}, {pipeline_mode = #tpu.pipeline_mode<synchronous>, transform_indices = @transform_4, window_bounds = array<i64: 1, 128>}, {transform_indices = @transform_5, window_bounds = array<i64: 16, 128>}]} {
    %c0 = arith.constant 0 : index
    %c0_0 = arith.constant 0 : index
    %0 = vector.load %arg1[%c0, %c0_0] : memref<16x128xf32, #tpu.memory_space<vmem>>, vector<16x128xf32>
    %1 = arith.truncf %0 : vector<16x128xf32> to vector<16x128xbf16>
    %c0_1 = arith.constant 0 : index
    %c0_2 = arith.constant 0 : index
    %2 = vector.load %arg2[%c0_1, %c0_2] : memref<128x128xbf16, #tpu.memory_space<vmem>>, vector<128x128xbf16>
    %cst = arith.constant dense<0.000000e+00> : vector<16x128xf32>
    %3 = tpu.matmul %1, %2, %cst {dimension_numbers = #tpu.dot_dimension_numbers<[1], [0], [0], [1], [0, 0, 1, 1], [], []>} : vector<16x128xbf16>, vector<128x128xbf16>, vector<16x128xf32> -> vector<16x128xf32>
    %c0_3 = arith.constant 0 : index
    %c0_4 = arith.constant 0 : index
    %4 = vector.load %arg3[%c0_3, %c0_4] : memref<1x128xf32, #tpu.memory_space<vmem>>, vector<1x128xf32>
    %5 = vector.broadcast %4 : vector<1x128xf32> to vector<16x128xf32>
    %6 = arith.addf %3, %5 : vector<16x128xf32>
    %cst_5 = arith.constant 0.000000e+00 : f32
    %7 = vector.broadcast %cst_5 : f32 to vector<16x128xf32>
    %8 = arith.maximumf %6, %7 : vector<16x128xf32>
    %9 = arith.truncf %8 : vector<16x128xf32> to vector<16x128xbf16>
    %c0_6 = arith.constant 0 : index
    %c0_7 = arith.constant 0 : index
    %10 = vector.load %arg4[%c0_6, %c0_7] : memref<128x128xbf16, #tpu.memory_space<vmem>>, vector<128x128xbf16>
    %cst_8 = arith.constant dense<0.000000e+00> : vector<16x128xf32>
    %11 = tpu.matmul %9, %10, %cst_8 {dimension_numbers = #tpu.dot_dimension_numbers<[1], [0], [0], [1], [0, 0, 1, 1], [], []>} : vector<16x128xbf16>, vector<128x128xbf16>, vector<16x128xf32> -> vector<16x128xf32>
    %12 = arith.addf %0, %11 : vector<16x128xf32>
    %c0_9 = arith.constant 0 : index
    %c0_10 = arith.constant 0 : index
    %13 = vector.load %arg5[%c0_9, %c0_10] : memref<1x128xf32, #tpu.memory_space<vmem>>, vector<1x128xf32>
    %14 = vector.broadcast %13 : vector<1x128xf32> to vector<16x128xf32>
    %15 = arith.addf %12, %14 : vector<16x128xf32>
    %c0_11 = arith.constant 0 : index
    %c0_12 = arith.constant 0 : index
    %16 = vector.load %arg6[%c0_11, %c0_12] : memref<16x128xf32, #tpu.memory_space<vmem>>, vector<16x128xf32>
    tpu.vector_store %arg6[%c0_11, %c0_12], %15 {strides = array<i32>} : memref<16x128xf32, #tpu.memory_space<vmem>>, vector<16x128xf32>,
    return
  }
  func.func @transform_0(%arg0: i32) -> (i32, i32) {
    %c0_i32 = arith.constant 0 : i32
    %c0_i32_0 = arith.constant 0 : i32
    return %arg0, %c0_i32 : i32, i32
  }
  func.func @transform_1(%arg0: i32) -> (i32, i32) {
    %c0_i32 = arith.constant 0 : i32
    %c0_i32_0 = arith.constant 0 : i32
    %c0_i32_1 = arith.constant 0 : i32
    return %c0_i32, %c0_i32_0 : i32, i32
  }
  func.func @transform_2(%arg0: i32) -> (i32, i32) {
    %c0_i32 = arith.constant 0 : i32
    %c0_i32_0 = arith.constant 0 : i32
    %c0_i32_1 = arith.constant 0 : i32
    return %c0_i32, %c0_i32_0 : i32, i32
  }
  func.func @transform_3(%arg0: i32) -> (i32, i32) {
    %c0_i32 = arith.constant 0 : i32
    %c0_i32_0 = arith.constant 0 : i32
    %c0_i32_1 = arith.constant 0 : i32
    return %c0_i32, %c0_i32_0 : i32, i32
  }
  func.func @transform_4(%arg0: i32) -> (i32, i32) {
    %c0_i32 = arith.constant 0 : i32
    %c0_i32_0 = arith.constant 0 : i32
    %c0_i32_1 = arith.constant 0 : i32
    return %c0_i32, %c0_i32_0 : i32, i32
  }
  func.func @transform_5(%arg0: i32) -> (i32, i32) {
    %c0_i32 = arith.constant 0 : i32
    %c0_i32_0 = arith.constant 0 : i32
    return %arg0, %c0_i32 : i32, i32
  }
}

</mosaic_0001>

<bundles_post_ra>
// kernel: tpu_custom_call.1
= control target key start
LH: loop header
LB: loop body
LE: loop exit
PB: predicated region body
PF: predicated region fallthrough
CT: control target
= control target key end

     0   :  { %10 = vsyncpa [#allocation3], 0  ;;  %s569_s0 = inlined_call_operand.hbm [shape: f32[16,128], index: 0, kind: input, shape index: {}]   ;;  %s570_s1 = inlined_call_operand.hbm [shape: bf16[128,128], index: 1, kind: input, shape index: {}]   ;;  %s571_s2 = inlined_call_operand.vmem [shape: f32[1,128], index: 2, kind: input, shape index: {}]   ;;  %s572_s3 = inlined_call_operand.hbm [shape: bf16[128,128], index: 3, kind: input, shape index: {}]   ;;  %s573_s4 = inlined_call_operand.vmem [shape: f32[1,128], index: 4, kind: input, shape index: {}]   ;;  %s574_s5 = inlined_call_operand.hbm [shape: f32[16,128], index: 5, kind: output, shape index: {}]  }
   0x1   :  { %11 = vsyncpa [#allocation6], 0 }
   0x2   :  { %12 = vsyncpa [#allocation4], 0  ;;  %s505_s18 = smov [#allocation5]  }
   0x3   :  { %s30_s19 = sshll.u32 %s505_s18, 4  ;;  %s31_s19 = int_to_ptr.vmem [resolvable:$true] %s30_s19 }
   0x4   :  { %s427_s20 = scalar_lea.vmem %s31_s19, 1024  ;;  %p432_p1 = scmp.lt.s32.totalorder %s31_s19, %s31_s19 }
   0x5   :  { %p428_p0 = scmp.ne.s32.totalorder %s31_s19, %s427_s20  ;;  %p433_p2 = scmp.lt.s32.totalorder %s427_s20, %s427_s20 }
   0x7   :  { %p434_p3 = por %p433_p2, %p432_p1 }
   0x9   :  { %p435_p4 = pnand %p434_p3, %p428_p0 }
   0xb   :  { %438 = shalt.err (!%p435_p4)
}
   0xc   :  { %s506_s21 = smov 64   ;;  %s507_s22 = smov 4  }
   0xd   :  { %36 = dma.hbm_to_vmem [thread:$0]  %s570_s1, 1024, %s31_s19, [#allocation6], %s506_s21, %s506_s21, %s507_s22  }
   0xe   :  { %s508_s25 = smov [#allocation2]  }
   0xf   :  { %s18_s26 = sshll.u32 %s508_s25, 4  ;;  %s19_s26 = int_to_ptr.vmem [resolvable:$true] %s18_s26 }
  0x10   :  { %s447_s27 = scalar_lea.vmem %s19_s26, 256  ;;  %p452_p6 = scmp.lt.s32.totalorder %s19_s26, %s19_s26 }
  0x11   :  { %p448_p5 = scmp.ne.s32.totalorder %s19_s26, %s447_s27  ;;  %p453_p7 = scmp.lt.s32.totalorder %s447_s27, %s447_s27 }
  0x13   :  { %p454_p8 = por %p453_p7, %p452_p6 }
  0x15   :  { %p455_p9 = pnand %p454_p8, %p448_p5 }
  0x17   :  { %458 = shalt.err (!%p455_p9)
}
  0x18   :  { %s509_s28 = smov 128   ;;  %s510_s29 = smov 8  }
  0x19   :  { %24 = dma.hbm_to_vmem [thread:$0]  %s569_s0, 256, %s19_s26, [#allocation3], %s509_s28, %s509_s28, %s510_s29  }
  0x1a   :  { %s511_s1 = smov [#allocation7]  }
  0x1b   :  { %s44_s7 = sshll.u32 %s511_s1, 4  ;;  %s45_s7 = int_to_ptr.vmem [resolvable:$true] %s44_s7 }
  0x1c   :  { %s467_s8 = scalar_lea.vmem %s45_s7, 1024  ;;  %p472_p11 = scmp.lt.s32.totalorder %s45_s7, %s45_s7 }
  0x1d   :  { %p468_p10 = scmp.ne.s32.totalorder %s45_s7, %s467_s8  ;;  %p473_p12 = scmp.lt.s32.totalorder %s467_s8, %s467_s8 }
  0x1f   :  { %p474_p13 = por %p473_p12, %p472_p11 }
  0x21   :  { %p475_p0 = pnand %p474_p13, %p468_p10 }
  0x23   :  { %478 = shalt.err (!%p475_p0)
}
  0x24   :  { %50 = dma.hbm_to_vmem [thread:$0]  %s572_s3, 1024, %s45_s7, [#allocation6], %s506_s21, %s506_s21, %s507_s22  }
  0x25   :  { %499 = dma.done.wait [#allocation3], 256  }
  0x26   :  { %500 = vsyncadd [#allocation3], 4294967040 }
  0x27   :  { %501 = dma.done.wait [#allocation6], 2048  }
  0x28   :  { %502 = vsyncadd [#allocation6], 4294965248  ;;  %v512_v0 = vmov 0.0   ;;  %vm513_vm0 = vmmov 0   ;;  %v403_v1 = vld [vmem:[#allocation5 + $0x38] sm:$0xff]   ;;  %v404_v2 = vld [vmem:[#allocation5 + $0x30] sm:$0xff]  }
  0x29   :  { %353 = vmatprep.subr.bf16.mxu0 %v512_v0  ;;  %369 = vmatprep.mubr.msk.bf16.mxu0 %vm513_vm0, %v512_v0  ;;  %v405_v3 = vld [vmem:[#allocation5 + $0x28] sm:$0xff]   ;;  %v411_v4 = vld [vmem:[#allocation7 + $0x38] sm:$0xff]   ;;  %v406_v5 = vld [vmem:[#allocation5 + $0x20] sm:$0xff]  }
  0x2a   :  { %373 = vmatprep.subr.bf16.mxu1 %v512_v0  ;;  %389 = vmatprep.mubr.msk.bf16.mxu1 %vm513_vm0, %v512_v0  ;;  %v412_v6 = vld [vmem:[#allocation7 + $0x30] sm:$0xff]   ;;  %v407_v7 = vld [vmem:[#allocation5 + $0x18] sm:$0xff]   ;;  %v413_v8 = vld [vmem:[#allocation7 + $0x28] sm:$0xff]  }
  0x2b   :  { %354 = vmatpush3.bf16.msra.mxu0 %v403_v1  ;;  %374 = vmatpush3.bf16.msra.mxu1 %v411_v4  ;;  %v408_v9 = vld [vmem:[#allocation5 + $0x10] sm:$0xff]   ;;  %v414_v10 = vld [vmem:[#allocation7 + $0x20] sm:$0xff]   ;;  %v409_v11 = vld [vmem:[#allocation5 + $0x8] sm:$0xff]  }
  0x2c   :  { %355 = vmatprep.subr.bf16.mxu0 %v512_v0  ;;  %375 = vmatprep.subr.bf16.mxu1 %v512_v0  ;;  %v415_v12 = vld [vmem:[#allocation7 + $0x18] sm:$0xff]   ;;  %v410_v13 = vld [vmem:[#allocation5] sm:$0xff]   ;;  %v63_v14 = vld [vmem:[#allocation2] sm:$0xff] }
  0x2d   :  { %v64_v15 = vld [vmem:[#allocation2 + $0x8] sm:$0xff]  ;;  %v416_v17 = vld [vmem:[#allocation7 + $0x10] sm:$0xff]   ;;  %v417_v18 = vld [vmem:[#allocation7 + $0x8] sm:$0xff]  }
  0x2e   :  { %v65_v16 = vpack.c.bf16 %v64_v15, %v63_v14  ;;  %v418_v19 = vld [vmem:[#allocation7] sm:$0xff]   ;;  %v317_v20 = vld [vmem:[%s571_s2] ss:$0 sm:$0xff]  ;;  %s514_s2 = smov [#allocation8]  }
  0x2f   :  { %356 = vmatpush3.bf16.msra.mxu0 %v404_v2  ;;  %376 = vmatpush3.bf16.msra.mxu1 %v412_v6  ;;  %v334_v31 = vld [vmem:[%s573_s4] ss:$0 sm:$0xff]  ;;  %s304_s13 = sshll.u32 %s514_s2, 4  ;;  %s305_s13 = int_to_ptr.vmem [resolvable:$true] %s304_s13 }
  0x30   :  { %357 = vmatprep.subr.bf16.mxu0 %v512_v0  ;;  %377 = vmatprep.subr.bf16.mxu1 %v512_v0  ;;  %s479_s14 = scalar_lea.vmem %s305_s13, 256  ;;  %p484_p2 = scmp.lt.s32.totalorder %s305_s13, %s305_s13 }
  0x31   :  { %p480_p1 = scmp.ne.s32.totalorder %s305_s13, %s479_s14  ;;  %p485_p3 = scmp.lt.s32.totalorder %s479_s14, %s479_s14 }
  0x33   :  { %358 = vmatpush3.bf16.msra.mxu0 %v405_v3  ;;  %378 = vmatpush3.bf16.msra.mxu1 %v413_v8  ;;  %p486_p4 = por %p485_p3, %p484_p2 }
  0x34   :  { %359 = vmatprep.subr.bf16.mxu0 %v512_v0  ;;  %379 = vmatprep.subr.bf16.mxu1 %v512_v0 }
  0x35   :  { %p487_p5 = pnand %p486_p4, %p480_p1 }
  0x37   :  { %360 = vmatpush3.bf16.msra.mxu0 %v406_v5  ;;  %380 = vmatpush3.bf16.msra.mxu1 %v414_v10 }
  0x38   :  { %361 = vmatprep.subr.bf16.mxu0 %v512_v0  ;;  %381 = vmatprep.subr.bf16.mxu1 %v512_v0 }
  0x3b   :  { %362 = vmatpush3.bf16.msra.mxu0 %v407_v7  ;;  %382 = vmatpush3.bf16.msra.mxu1 %v415_v12 }
  0x3c   :  { %363 = vmatprep.subr.bf16.mxu0 %v512_v0  ;;  %383 = vmatprep.subr.bf16.mxu1 %v512_v0 }
  0x3f   :  { %364 = vmatpush3.bf16.msra.mxu0 %v408_v9  ;;  %384 = vmatpush3.bf16.msra.mxu1 %v416_v17 }
  0x40   :  { %365 = vmatprep.subr.bf16.mxu0 %v512_v0  ;;  %385 = vmatprep.subr.bf16.mxu1 %v512_v0 }
  0x43   :  { %366 = vmatpush3.bf16.msra.mxu0 %v409_v11  ;;  %386 = vmatpush3.bf16.msra.mxu1 %v417_v18 }
  0x44   :  { %367 = vmatprep.subr.bf16.mxu0 %v512_v0  ;;  %387 = vmatprep.subr.bf16.mxu1 %v512_v0 }
  0x47   :  { %368 = vmatpush3.bf16.msra.mxu0 %v410_v13  ;;  %388 = vmatpush3.bf16.msra.mxu1 %v418_v19 }
  0x4a   :  { %370 = vmatmul.mubr.bf16.vlgmr.msra.gmra.mxu0 %v65_v16 }
 0x10a   :  { %v171_v21 = vpop.f32.mrf.mxu0 }
 0x10b   :  { %v172_v23 = vadd.f32 %v317_v20, %v171_v21 }
 0x10c   :  { %v371_v22 = vpop.f32.mrf.mxu0 }
 0x10d   :  { %v178_v27 = vmax.f32 %v172_v23, 0.0 }
 0x10e   :  { %v174_v24 = vpop.f32.mrf.mxu0 }
 0x10f   :  { %v175_v25 = vadd.f32 %v317_v20, %v174_v24 }
 0x110   :  { %v372_v26 = vpop.f32.mrf.mxu0 }
 0x111   :  { %v179_v28 = vmax.f32 %v175_v25, 0.0 }
 0x113   :  { %v180_v29 = vpack.c.bf16 %v179_v28, %v178_v27 }
 0x115   :  { %390 = vmatmul.mubr.bf16.vlgmr.msra.gmra.mxu1 %v180_v29 }
 0x1d5   :  { %v279_v30 = vpop.f32.mrf.mxu1 }
 0x1d6   :  { %v286_v32 = vadd.f32 %v279_v30, %v63_v14 }
 0x1d7   :  { %v391_v33 = vpop.f32.mrf.mxu1 }
 0x1d8   :  { %v295_v34 = vadd.f32 %v334_v31, %v286_v32 }
 0x1d9   :  { %v282_v35 = vpop.f32.mrf.mxu1 }
 0x1da   :  { %297 = vst [vmem:[#allocation8] sm:$0xff] %v295_v34  ;;  %v287_v36 = vadd.f32 %v282_v35, %v64_v15 }
 0x1db   :  { %v392_v37 = vpop.f32.mrf.mxu1 }
 0x1dc   :  { %v296_v38 = vadd.f32 %v334_v31, %v287_v36 }
 0x1de   :  { %298 = vst [vmem:[#allocation8 + $0x8] sm:$0xff] %v296_v38 }
 0x1df   :  { %490 = shalt.err (!%p487_p5)
}
 0x1e0   :  { %310 = dma.vmem_to_hbm [thread:$0]  %s305_s13, 256, %s574_s5, [#allocation4], %s509_s28, %s509_s28, %s510_s29  }
 0x1e1   :  { %503 = dma.done.wait [#allocation4], 256  }
 0x1e2   :  { %504 = vsyncadd [#allocation4], 4294967040 }
 0x1e3   :  { %314 = vsyncpa [#allocation3], 1 }
 0x1e4   :  { %315 = vsyncpa [#allocation6], 1 }
 0x1e5   :  { %316 = vsyncpa [#allocation4], 1 }

</bundles_post_ra>
